<compile_context>
chip_gen: v7x
topology: tpu7x:2x2x1
jax: 0.10.0
libtpu: 0.0.40
codegen_flags: <defaults>
</compile_context>

<pallas_src>
import functools

import jax
import jax.numpy as jnp
from jax.experimental import pallas as pl
from jax.experimental.pallas import tpu as pltpu


def _gelu_tanh(x):
    c = jnp.sqrt(2.0 / jnp.pi).astype(x.dtype)
    return 0.5 * x * (1.0 + jnp.tanh(c * (x + 0.044715 * x * x * x)))


def _round_up(x, m):
    return ((x + m - 1) // m) * m


def _pick_ff_tile(FF, ff_tile):
    """Largest 128-multiple divisor of FF that is <= ff_tile (FF itself as last resort)."""
    ff_tile = min(ff_tile, FF)
    if FF % ff_tile == 0 and (ff_tile % 128 == 0 or ff_tile == FF):
        return ff_tile
    best = 0
    d = 128
    while d <= min(FF, ff_tile):
        if FF % d == 0:
            best = d
        d += 128
    if best:
        return best
    return ff_tile if FF % ff_tile == 0 else FF


def _auto_tiles(H, FF, E, in_itemsize, out_itemsize):
    """Generation-aware (tm, ff_tile, vmem_limit, min_token_tiles)."""
    try:
        vmem_cap = pltpu.get_tpu_info().vmem_capacity_bytes
    except Exception:
        vmem_cap = 64 * 1024 * 1024  # conservative: assume v7x-class 64 MiB/TC
    if vmem_cap >= 100 * 1024 * 1024:
        # v5e / v6e: 128 MiB physical VMEM -> maximize weight reuse per DMA.
        tm, ff, limit, min_tiles = 512, 1024, 100 * 1024 * 1024, 1
    else:
        # v7x-class: 64 MiB per TC, 2 TCs/chip -> smaller tiles, keep token axis splittable.
        tm, ff, limit, min_tiles = 256, 512, 52 * 1024 * 1024, 2

    def working_set(tm_, ff_):
        ins = 2 * (tm_ * H + H * ff_ + ff_ + ff_ * H + H + tm_ * E) * in_itemsize
        outs = 2 * tm_ * H * out_itemsize
        scratch = tm_ * H * 4 + tm_ * 4
        return ins + outs + scratch

    for _ in range(8):
        if working_set(tm, ff) <= int(0.85 * limit) or (tm <= 64 and ff <= 128):
            break
        if ff > 256:
            ff //= 2
        else:
            tm = max(64, tm // 2)
    return tm, ff, limit, min_tiles


# ---------------------------------------------------------------------------
# Expert-MLP + weighted combine kernel.
#   grid = (num_token_tiles, E, num_ff_tiles)
#   accumulator (out_ref itself when out dtype is f32, else f32 VMEM scratch)
#   accumulates sum_e w[t,e] * MLP_e(x[t]) streamed over FF tiles.
# ---------------------------------------------------------------------------
def moe_kernel(mask_ref, x_ref, w1_ref, b1_ref, w2_ref, b2_ref, cw_ref,
               out_ref, *scratch, use_out_acc, scale_h):
    i = pl.program_id(0)
    e = pl.program_id(1)
    f = pl.program_id(2)
    n_e = pl.num_programs(1)
    n_f = pl.num_programs(2)

    if use_out_acc:
        (w_sc,) = scratch          # (tm, 1) f32 combine-weight cache
        acc_ref = out_ref          # f32 output block is resident across (e, f)
    else:
        acc_ref, w_sc = scratch    # f32 acc scratch + combine-weight cache

    @pl.when(jnp.logical_and(e == 0, f == 0))
    def _init():
        acc_ref[...] = jnp.zeros_like(acc_ref)

    # Skip experts with no routed token in this tile (their combine weights are
    # all zero, so skipping is exact).
    routed = mask_ref[i * n_e + e] != 0

    # Once per (token tile, expert): select combine-weight column e, cache it,
    # and add the (weighted) second-layer bias. Keeps the hot FF loop to
    # dot + GELU + dot + accumulate.
    @pl.when(jnp.logical_and(routed, f == 0))
    def _per_expert_setup():
        cw = cw_ref[...].astype(jnp.float32)                         # (tm, E)
        sel = jax.lax.broadcasted_iota(jnp.int32, cw.shape, 1) == e
        w = jnp.sum(jnp.where(sel, cw, 0.0), axis=-1, keepdims=True)  # (tm, 1)
        w_sc[...] = w
        acc_ref[...] += w * b2_ref[0].astype(jnp.float32)

    @pl.when(routed)
    def _compute():
        h = jnp.dot(x_ref[...], w1_ref[0], preferred_element_type=jnp.float32)
        h = _gelu_tanh(h + b1_ref[0].astype(jnp.float32))            # (tm, tff) f32
        w = w_sc[...]                                                # (tm, 1)  f32
        if scale_h:
            # Scale the (tm, ff_tile) activations (cheaper than (tm, H) when ff_tile < H).
            h = h * w
            y = jnp.dot(h.astype(w2_ref.dtype), w2_ref[0],
                        preferred_element_type=jnp.float32)          # (tm, H)
        else:
            y = jnp.dot(h.astype(w2_ref.dtype), w2_ref[0],
                        preferred_element_type=jnp.float32)
            y = y * w
        acc_ref[...] += y

    if not use_out_acc:
        @pl.when(jnp.logical_and(e == n_e - 1, f == n_f - 1))
        def _finalize():
            out_ref[...] = acc_ref[...].astype(out_ref.dtype)


def moe_experts_forward(x2d, w1, b1, w2, b2, combine, mask, *, tm, ff_tile,
                        out_dtype, vmem_limit):
    Tp, H = x2d.shape
    E, _, FF = w1.shape
    nt = Tp // tm
    nf = FF // ff_tile

    use_out_acc = jnp.dtype(out_dtype) == jnp.dtype(jnp.float32)
    scale_h = ff_tile < H

    scratch = [pltpu.VMEM((tm, 1), jnp.float32)]           # combine-weight cache
    if not use_out_acc:
        scratch = [pltpu.VMEM((tm, H), jnp.float32)] + scratch

    in_isz = jnp.dtype(x2d.dtype).itemsize
    out_isz = jnp.dtype(out_dtype).itemsize
    cost = pl.CostEstimate(
        flops=4 * Tp * H * FF * E,
        transcendentals=Tp * FF * E,
        bytes_accessed=(nt * E * (H * FF + FF + FF * H + H) * in_isz
                        + Tp * (H + E) * in_isz + Tp * H * out_isz),
    )

    kernel = functools.partial(moe_kernel, use_out_acc=use_out_acc, scale_h=scale_h)

    return pl.pallas_call(
        kernel,
        out_shape=jax.ShapeDtypeStruct((Tp, H), out_dtype),
        grid_spec=pltpu.PrefetchScalarGridSpec(
            num_scalar_prefetch=1,               # routed mask -> SMEM
            grid=(nt, E, nf),
            in_specs=[
                pl.BlockSpec((tm, H), lambda i, e, f, m: (i, 0)),             # x tile
                pl.BlockSpec((1, H, ff_tile), lambda i, e, f, m: (e, 0, f)),  # W1[e]
                pl.BlockSpec((1, 1, ff_tile), lambda i, e, f, m: (e, 0, f)),  # b1[e]
                pl.BlockSpec((1, ff_tile, H), lambda i, e, f, m: (e, f, 0)),  # W2[e]
                pl.BlockSpec((1, 1, H), lambda i, e, f, m: (e, 0, 0)),        # b2[e]
                pl.BlockSpec((tm, E), lambda i, e, f, m: (i, 0)),             # combine
            ],
            out_specs=pl.BlockSpec((tm, H), lambda i, e, f, m: (i, 0)),
            scratch_shapes=scratch,
        ),
        compiler_params=pltpu.CompilerParams(
            dimension_semantics=("parallel", "arbitrary", "arbitrary"),
            vmem_limit_bytes=vmem_limit,
        ),
        cost_estimate=cost,
    )(mask, x2d, w1, b1, w2, b2, combine)


# ---------------------------------------------------------------------------
# Full MoEBlock forward
# ---------------------------------------------------------------------------
@functools.partial(
    jax.jit,
    static_argnames=("top_k", "tm", "ff_tile", "vmem_limit", "min_tiles", "compute_dtype"))
def _moe_block_forward(x, params, *, top_k, tm, ff_tile, vmem_limit, min_tiles,
                       compute_dtype):
    B, S, H = x.shape
    T = B * S
    x2d = x.reshape(T, H)
    out_dtype = x2d.dtype

    # --- gate: tiny GEMM (lane width E << 128) -> plain XLA ---
    router_logits = x2d @ params["wg_t"]                       # (T, E)
    E = router_logits.shape[-1]

    # --- routing glue (matches torch softmax/topk/renorm semantics) ---
    probs = jax.nn.softmax(router_logits.astype(jnp.float32), axis=-1)
    topk_w, topk_idx = jax.lax.top_k(probs, top_k)             # (T, k)
    if top_k != 1:
        topk_w = topk_w / jnp.sum(topk_w, axis=-1, keepdims=True)
    topk_w = topk_w.astype(out_dtype)
    combine = jnp.sum(
        jax.nn.one_hot(topk_idx, E, dtype=out_dtype) * topk_w[..., None], axis=1)

    # --- streaming dtype for the kernel (bf16 halves weight DMA; f32 accumulation) ---
    cdt = jnp.dtype(compute_dtype) if compute_dtype is not None else out_dtype
    xk = x2d.astype(cdt)
    w1 = params["w1"].astype(cdt)
    b1 = params["b1"].astype(cdt)
    w2 = params["w2"].astype(cdt)
    b2 = params["b2"].astype(cdt)
    cwk = combine.astype(cdt)

    # --- tiling: clamp tm for tiny T; ensure >= min_tiles token tiles (v7x megacore);
    #     pad T to a multiple of the token tile (padded rows have zero combine weight).
    tm_eff = min(tm, _round_up(T, 8))
    if min_tiles > 1 and T >= 8 * min_tiles:
        tm_eff = min(tm_eff, _round_up(-(-T // min_tiles), 8))
    Tp = _round_up(T, tm_eff)
    if Tp != T:
        xk = jnp.pad(xk, ((0, Tp - T), (0, 0)))
        cwk = jnp.pad(cwk, ((0, Tp - T), (0, 0)))

    FF = params["w1"].shape[-1]
    ff_eff = _pick_ff_tile(FF, ff_tile)

    # per-(token-tile, expert) routed mask, flattened -> 1-D int32 for SMEM
    nt = Tp // tm_eff
    mask = (cwk.reshape(nt, tm_eff, E) != 0).any(axis=1)
    mask = mask.astype(jnp.int32).reshape(-1)

    out2d = moe_experts_forward(
        xk, w1, b1, w2, b2, cwk, mask,
        tm=tm_eff, ff_tile=ff_eff, out_dtype=out_dtype, vmem_limit=vmem_limit)
    return out2d[:T].reshape(B, S, H), router_logits


def moe_block_forward(x, params, *, top_k, compute_dtype=None, tm=None, ff_tile=None):
    H = x.shape[-1]
    E, _, FF = params["w1"].shape
    in_isz = (jnp.dtype(compute_dtype) if compute_dtype is not None
              else jnp.dtype(x.dtype)).itemsize
    auto_tm, auto_ff, vmem_limit, min_tiles = _auto_tiles(
        H, FF, E, in_isz, jnp.dtype(x.dtype).itemsize)
    return _moe_block_forward(
        x, params, top_k=top_k,
        tm=(tm or auto_tm), ff_tile=(ff_tile or auto_ff),
        vmem_limit=vmem_limit, min_tiles=min_tiles, compute_dtype=compute_dtype)


# ---------------------------------------------------------------------------
# Pure-JAX reference (same math) for a sanity check
# ---------------------------------------------------------------------------
def moe_block_reference(x, params, *, top_k):
    B, S, H = x.shape
    x2d = x.reshape(-1, H)
    logits = x2d @ params["wg_t"]
    probs = jax.nn.softmax(logits.astype(jnp.float32), axis=-1)
    topk_w, topk_idx = jax.lax.top_k(probs, top_k)
    if top_k != 1:
        topk_w = topk_w / jnp.sum(topk_w, axis=-1, keepdims=True)
    topk_w = topk_w.astype(x.dtype)
    E = logits.shape[-1]
    combine = jnp.sum(
        jax.nn.one_hot(topk_idx, E, dtype=x.dtype) * topk_w[..., None], axis=1)
    out = jnp.zeros_like(x2d)
    for e in range(E):
        h = _gelu_tanh(x2d @ params["w1"][e] + params["b1"][e, 0])
        y = h @ params["w2"][e] + params["b2"][e, 0]
        out = out + y * combine[:, e:e + 1]
    return out.reshape(B, S, H), logits


def init_params(key, n_embd, num_experts):
    FF = 4 * n_embd
    ks = jax.random.split(key, 5)
    scale = 0.02
    return {
        "wg_t": scale * jax.random.normal(ks[0], (n_embd, num_experts), jnp.float32),
        "w1": scale * jax.random.normal(ks[1], (num_experts, n_embd, FF), jnp.float32),
        "b1": scale * jax.random.normal(ks[2], (num_experts, 1, FF), jnp.float32),
        "w2": scale * jax.random.normal(ks[3], (num_experts, FF, n_embd), jnp.float32),
        "b2": scale * jax.random.normal(ks[4], (num_experts, 1, n_embd), jnp.float32),
    }


if __name__ == "__main__":
    # small config: n_embd=32, num_experts=4, top_k=2, dropout=0.0 (identity)
    B, S, H, E, K = 2, 8, 32, 4, 2
    key = jax.random.PRNGKey(0)
    kx, kp = jax.random.split(key)
    x = jax.random.normal(kx, (B, S, H), jnp.float32)
    params = init_params(kp, H, E)

    # f32 path
    out, router_logits = moe_block_forward(x, params, top_k=K)
    out = jax.block_until_ready(out)
    router_logits = jax.block_until_ready(router_logits)

    ref_out, ref_logits = moe_block_reference(x, params, top_k=K)
    assert out.shape == (B, S, H) and router_logits.shape == (B * S, E)
    err = float(jnp.max(jnp.abs(out - ref_out)))
    assert jnp.allclose(out, ref_out, rtol=1e-3, atol=1e-4), err
    assert jnp.allclose(router_logits, ref_logits, rtol=1e-4, atol=1e-5)

    # bf16 weight/activation streaming path (f32 accumulation inside the kernel)
    out_bf16, _ = moe_block_forward(x, params, top_k=K, compute_dtype=jnp.bfloat16)
    out_bf16 = jax.block_until_ready(out_bf16)
    err_bf16 = float(jnp.max(jnp.abs(out_bf16 - ref_out)))
    assert jnp.allclose(out_bf16, ref_out, rtol=1e-1, atol=2e-2), err_bf16

    print("KERNEL_OK")
</pallas_src>

<mosaic_0001>
module attributes {stable_mosaic.version = 11 : i64} {
  func.func @moe_kernel(%arg0: i32, %arg1: i32, %arg2: i32, %arg3: memref<8xi32, #tpu.memory_space<smem>>, %arg4: memref<8x32xf32, #tpu.memory_space<vmem>>, %arg5: memref<1x32x128xf32, #tpu.memory_space<vmem>>, %arg6: memref<1x1x128xf32, #tpu.memory_space<vmem>>, %arg7: memref<1x128x32xf32, #tpu.memory_space<vmem>>, %arg8: memref<1x1x32xf32, #tpu.memory_space<vmem>>, %arg9: memref<8x4xf32, #tpu.memory_space<vmem>>, %arg10: memref<8x32xf32, #tpu.memory_space<vmem>>, %arg11: memref<8x1xf32, #tpu.memory_space<vmem>>) attributes {dimension_semantics = [#tpu.dimension_semantics<parallel>, #tpu.dimension_semantics<arbitrary>, #tpu.dimension_semantics<arbitrary>], iteration_bounds = array<i64: 2, 4, 1>, scalar_prefetch = 1 : i64, scratch_operands = 1 : i64, tpu.core_type = #tpu.core_type<tc>, window_params = [{transform_indices = @transform_0, window_bounds = array<i64: 8, 32>}, {transform_indices = @transform_1, window_bounds = array<i64: 1, 32, 128>}, {transform_indices = @transform_2, window_bounds = array<i64: 1, 1, 128>}, {transform_indices = @transform_3, window_bounds = array<i64: 1, 128, 32>}, {transform_indices = @transform_4, window_bounds = array<i64: 1, 1, 32>}, {transform_indices = @transform_5, window_bounds = array<i64: 8, 4>}, {transform_indices = @transform_6, window_bounds = array<i64: 8, 32>}]} {
    %c0_i32 = arith.constant 0 : i32
    %0 = arith.cmpi eq, %arg1, %c0_i32 : i32
    %c0_i32_0 = arith.constant 0 : i32
    %1 = arith.cmpi eq, %arg2, %c0_i32_0 : i32
    %2 = arith.andi %0, %1 : i1
    %3 = arith.extui %2 : i1 to i32
    %c0_i32_1 = arith.constant 0 : i32
    %4 = arith.cmpi ne, %3, %c0_i32_1 : i32
    scf.if %4 {
      %cst = arith.constant 0.000000e+00 : f32
      %16 = vector.broadcast %cst : f32 to vector<8x32xf32>
      %c0 = arith.constant 0 : index
      %c0_6 = arith.constant 0 : index
      %17 = vector.load %arg10[%c0, %c0_6] : memref<8x32xf32, #tpu.memory_space<vmem>>, vector<8x32xf32>
      tpu.vector_store %arg10[%c0, %c0_6], %16 {strides = array<i32>} : memref<8x32xf32, #tpu.memory_space<vmem>>, vector<8x32xf32>,
    } else {
    }
    %c4_i32 = arith.constant 4 : i32
    %5 = arith.muli %arg0, %c4_i32 : i32
    %6 = arith.addi %5, %arg1 : i32
    %7 = arith.index_cast %6 : i32 to index
    %8 = memref.load %arg3[%7] : memref<8xi32, #tpu.memory_space<smem>>
    %c0_i32_2 = arith.constant 0 : i32
    %9 = arith.cmpi ne, %8, %c0_i32_2 : i32
    %c0_i32_3 = arith.constant 0 : i32
    %10 = arith.cmpi eq, %arg2, %c0_i32_3 : i32
    %11 = arith.andi %9, %10 : i1
    %12 = arith.extui %11 : i1 to i32
    %c0_i32_4 = arith.constant 0 : i32
    %13 = arith.cmpi ne, %12, %c0_i32_4 : i32
    scf.if %13 {
      %c0 = arith.constant 0 : index
      %c0_6 = arith.constant 0 : index
      %16 = vector.load %arg9[%c0, %c0_6] : memref<8x4xf32, #tpu.memory_space<vmem>>, vector<8x4xf32>
      %17 = tpu.iota {dimensions = array<i32: 1>} : vector<8x4xi32>
      %18 = vector.broadcast %arg1 : i32 to vector<8x4xi32>
      %19 = arith.cmpi eq, %17, %18 : vector<8x4xi32>
      %cst = arith.constant 0.000000e+00 : f32
      %20 = vector.broadcast %cst : f32 to vector<8x4xf32>
      %21 = arith.select %19, %16, %20 : vector<8x4xi1>, vector<8x4xf32>
      %cst_7 = arith.constant dense<0.000000e+00> : vector<8xf32>
      %22 = vector.multi_reduction <add>, %21, %cst_7 [1] : vector<8x4xf32> to vector<8xf32>
      %23 = vector.shape_cast %22 : vector<8xf32> to vector<8x1xf32>
      %c0_8 = arith.constant 0 : index
      %c0_9 = arith.constant 0 : index
      %24 = vector.load %arg11[%c0_8, %c0_9] : memref<8x1xf32, #tpu.memory_space<vmem>>, vector<8x1xf32>
      tpu.vector_store %arg11[%c0_8, %c0_9], %23 {strides = array<i32>} : memref<8x1xf32, #tpu.memory_space<vmem>>, vector<8x1xf32>,
      %c0_10 = arith.constant 0 : index
      %c0_11 = arith.constant 0 : index
      %25 = vector.load %arg10[%c0_10, %c0_11] : memref<8x32xf32, #tpu.memory_space<vmem>>, vector<8x32xf32>
      %c0_12 = arith.constant 0 : index
      %c0_13 = arith.constant 0 : index
      %c0_14 = arith.constant 0 : index
      %26 = vector.load %arg8[%c0_12, %c0_13, %c0_14] : memref<1x1x32xf32, #tpu.memory_space<vmem>>, vector<1x1x32xf32>
      %27 = vector.shape_cast %26 : vector<1x1x32xf32> to vector<1x32xf32>
      %28 = vector.broadcast %23 : vector<8x1xf32> to vector<8x32xf32>
      %29 = vector.broadcast %27 : vector<1x32xf32> to vector<8x32xf32>
      %30 = arith.mulf %28, %29 : vector<8x32xf32>
      %31 = arith.addf %25, %30 : vector<8x32xf32>
      %c0_15 = arith.constant 0 : index
      %c0_16 = arith.constant 0 : index
      %32 = vector.load %arg10[%c0_15, %c0_16] : memref<8x32xf32, #tpu.memory_space<vmem>>, vector<8x32xf32>
      tpu.vector_store %arg10[%c0_15, %c0_16], %31 {strides = array<i32>} : memref<8x32xf32, #tpu.memory_space<vmem>>, vector<8x32xf32>,
    } else {
    }
    %14 = arith.extui %9 : i1 to i32
    %c0_i32_5 = arith.constant 0 : i32
    %15 = arith.cmpi ne, %14, %c0_i32_5 : i32
    scf.if %15 {
      %c0 = arith.constant 0 : index
      %c0_6 = arith.constant 0 : index
      %16 = vector.load %arg4[%c0, %c0_6] : memref<8x32xf32, #tpu.memory_space<vmem>>, vector<8x32xf32>
      %c0_7 = arith.constant 0 : index
      %c0_8 = arith.constant 0 : index
      %c0_9 = arith.constant 0 : index
      %17 = vector.load %arg5[%c0_7, %c0_8, %c0_9] : memref<1x32x128xf32, #tpu.memory_space<vmem>>, vector<1x32x128xf32>
      %18 = vector.shape_cast %17 : vector<1x32x128xf32> to vector<32x128xf32>
      %cst = arith.constant dense<0.000000e+00> : vector<8x128xf32>
      %19 = tpu.matmul %16, %18, %cst {dimension_numbers = #tpu.dot_dimension_numbers<[1], [0], [0], [1], [0, 0, 1, 1], [], []>} : vector<8x32xf32>, vector<32x128xf32>, vector<8x128xf32> -> vector<8x128xf32>
      %c0_10 = arith.constant 0 : index
      %c0_11 = arith.constant 0 : index
      %c0_12 = arith.constant 0 : index
      %20 = vector.load %arg6[%c0_10, %c0_11, %c0_12] : memref<1x1x128xf32, #tpu.memory_space<vmem>>, vector<1x1x128xf32>
      %21 = vector.shape_cast %20 : vector<1x1x128xf32> to vector<1x128xf32>
      %22 = vector.broadcast %21 : vector<1x128xf32> to vector<8x128xf32>
      %23 = arith.addf %19, %22 : vector<8x128xf32>
      %cst_13 = arith.constant 0.636619746 : f32
      %24 = math.sqrt %cst_13 : f32
      %cst_14 = arith.constant 5.000000e-01 : f32
      %25 = vector.broadcast %cst_14 : f32 to vector<8x128xf32>
      %26 = arith.mulf %25, %23 : vector<8x128xf32>
      %cst_15 = arith.constant 4.471500e-02 : f32
      %27 = vector.broadcast %cst_15 : f32 to vector<8x128xf32>
      %28 = arith.mulf %27, %23 : vector<8x128xf32>
      %29 = arith.mulf %28, %23 : vector<8x128xf32>
      %30 = arith.mulf %29, %23 : vector<8x128xf32>
      %31 = arith.addf %23, %30 : vector<8x128xf32>
      %32 = vector.broadcast %24 : f32 to vector<8x128xf32>
      %33 = arith.mulf %32, %31 : vector<8x128xf32>
      %34 = math.tanh %33 : vector<8x128xf32>
      %cst_16 = arith.constant 1.000000e+00 : f32
      %35 = vector.broadcast %cst_16 : f32 to vector<8x128xf32>
      %36 = arith.addf %35, %34 : vector<8x128xf32>
      %37 = arith.mulf %26, %36 : vector<8x128xf32>
      %c0_17 = arith.constant 0 : index
      %c0_18 = arith.constant 0 : index
      %38 = vector.load %arg11[%c0_17, %c0_18] : memref<8x1xf32, #tpu.memory_space<vmem>>, vector<8x1xf32>
      %c0_19 = arith.constant 0 : index
      %c0_20 = arith.constant 0 : index
      %c0_21 = arith.constant 0 : index
      %39 = vector.load %arg7[%c0_19, %c0_20, %c0_21] : memref<1x128x32xf32, #tpu.memory_space<vmem>>, vector<1x128x32xf32>
      %40 = vector.shape_cast %39 : vector<1x128x32xf32> to vector<128x32xf32>
      %cst_22 = arith.constant dense<0.000000e+00> : vector<8x32xf32>
      %41 = tpu.matmul %37, %40, %cst_22 {dimension_numbers = #tpu.dot_dimension_numbers<[1], [0], [0], [1], [0, 0, 1, 1], [], []>} : vector<8x128xf32>, vector<128x32xf32>, vector<8x32xf32> -> vector<8x32xf32>
      %42 = vector.broadcast %38 : vector<8x1xf32> to vector<8x32xf32>
      %43 = arith.mulf %41, %42 : vector<8x32xf32>
      %c0_23 = arith.constant 0 : index
      %c0_24 = arith.constant 0 : index
      %44 = vector.load %arg10[%c0_23, %c0_24] : memref<8x32xf32, #tpu.memory_space<vmem>>, vector<8x32xf32>
      %45 = arith.addf %44, %43 : vector<8x32xf32>
      %c0_25 = arith.constant 0 : index
      %c0_26 = arith.constant 0 : index
      %46 = vector.load %arg10[%c0_25, %c0_26] : memref<8x32xf32, #tpu.memory_space<vmem>>, vector<8x32xf32>
      tpu.vector_store %arg10[%c0_25, %c0_26], %45 {strides = array<i32>} : memref<8x32xf32, #tpu.memory_space<vmem>>, vector<8x32xf32>,
    } else {
    }
    return
  }
  func.func @transform_0(%arg0: i32, %arg1: i32, %arg2: i32, %arg3: memref<8xi32, #tpu.memory_space<smem>>) -> (i32, i32) {
    %c0_i32 = arith.constant 0 : i32
    %c0_i32_0 = arith.constant 0 : i32
    return %arg0, %c0_i32 : i32, i32
  }
  func.func @transform_1(%arg0: i32, %arg1: i32, %arg2: i32, %arg3: memref<8xi32, #tpu.memory_space<smem>>) -> (i32, i32, i32) {
    %c0_i32 = arith.constant 0 : i32
    %c0_i32_0 = arith.constant 0 : i32
    return %arg1, %c0_i32, %arg2 : i32, i32, i32
  }
  func.func @transform_2(%arg0: i32, %arg1: i32, %arg2: i32, %arg3: memref<8xi32, #tpu.memory_space<smem>>) -> (i32, i32, i32) {
    %c0_i32 = arith.constant 0 : i32
    %c0_i32_0 = arith.constant 0 : i32
    return %arg1, %c0_i32, %arg2 : i32, i32, i32
  }
  func.func @transform_3(%arg0: i32, %arg1: i32, %arg2: i32, %arg3: memref<8xi32, #tpu.memory_space<smem>>) -> (i32, i32, i32) {
    %c0_i32 = arith.constant 0 : i32
    %c0_i32_0 = arith.constant 0 : i32
    return %arg1, %arg2, %c0_i32 : i32, i32, i32
  }
  func.func @transform_4(%arg0: i32, %arg1: i32, %arg2: i32, %arg3: memref<8xi32, #tpu.memory_space<smem>>) -> (i32, i32, i32) {
    %c0_i32 = arith.constant 0 : i32
    %c0_i32_0 = arith.constant 0 : i32
    %c0_i32_1 = arith.constant 0 : i32
    return %arg1, %c0_i32, %c0_i32_0 : i32, i32, i32
  }
  func.func @transform_5(%arg0: i32, %arg1: i32, %arg2: i32, %arg3: memref<8xi32, #tpu.memory_space<smem>>) -> (i32, i32) {
    %c0_i32 = arith.constant 0 : i32
    %c0_i32_0 = arith.constant 0 : i32
    return %arg0, %c0_i32 : i32, i32
  }
  func.func @transform_6(%arg0: i32, %arg1: i32, %arg2: i32, %arg3: memref<8xi32, #tpu.memory_space<smem>>) -> (i32, i32) {
    %c0_i32 = arith.constant 0 : i32
    %c0_i32_0 = arith.constant 0 : i32
    return %arg0, %c0_i32 : i32, i32
  }
}

</mosaic_0001>

<bundles_post_ra>
// kernel: _moe_block_forward.1
= control target key start
LH: loop header
LB: loop body
LE: loop exit
PB: predicated region body
PF: predicated region fallthrough
CT: control target
= control target key end

     0   :  { %s1350_s0 = inlined_call_operand.vmem [shape: s32[8], index: 0, kind: input, shape index: {}]   ;;  %s1351_s1 = inlined_call_operand.vmem [shape: f32[16,32], index: 1, kind: input, shape index: {}]   ;;  %s1352_s2 = inlined_call_operand.vmem [shape: f32[4,32,128], index: 2, kind: input, shape index: {}]   ;;  %s1353_s3 = inlined_call_operand.vmem [shape: f32[4,1,128], index: 3, kind: input, shape index: {}]   ;;  %s1354_s4 = inlined_call_operand.vmem [shape: f32[4,128,32], index: 4, kind: input, shape index: {}]   ;;  %s1355_s5 = inlined_call_operand.vmem [shape: f32[4,1,32], index: 5, kind: input, shape index: {}]   ;;  %s1356_s6 = inlined_call_operand.vmem [shape: f32[16,4], index: 6, kind: input, shape index: {}]   ;;  %s1357_s7 = inlined_call_operand.hbm [shape: f32[16,32], index: 7, kind: output, shape index: {}]  }
   0x1   :  { %1365 = sst [smem:[#allocation17_spill]] %s1351_s1  ;;  %s12_s26 = sshll.u32 %s1350_s0, 4  ;;  %s13_s26 = int_to_ptr.vmem [resolvable:$true] %s12_s26 }
   0x2   :  { %s991_s27 = scalar_lea.vmem %s13_s26, 16  ;;  %p996_p1 = scmp.lt.s32.totalorder %s13_s26, %s13_s26 }
   0x3   :  { %p992_p0 = scmp.ne.s32.totalorder %s13_s26, %s991_s27  ;;  %p997_p2 = scmp.lt.s32.totalorder %s991_s27, %s991_s27 }
   0x5   :  { %p998_p3 = por %p997_p2, %p996_p1 }
   0x7   :  { %p999_p4 = pnand %p998_p3, %p992_p0 }
   0x9   :  { %1002 = shalt.err (!%p999_p4)  }
   0xa   :  { %s1101_s28 = smov [#allocation4]  }
   0xb   :  { %15 = dma.vmem_to_smem %s13_s26, 16, %s1101_s28, [#allocation3] }
   0xc   :  { %1063 = dma.done.wait [#allocation3], 16 }
   0xd   :  { %1064 = vsyncadd [#allocation3], 4294967280 }
   0xe   :  { %17 = sfence }
   0xf   :  { %18 = vsyncpa [#allocation6], 0 }
  0x10   :  { %20 = vsyncpa [#allocation6 + $0x1], 0  ;;  %s1151_s29 = smov 0   ;;  %s1153_s30 = smov 0  }
  0x11   :  { %s1155_s0 = smov 0   ;;  %s1157_s8 = smov 0  }
  0x12   :  { %s1159_s9 = smov 0   ;;  %s1161_s10 = smov 0  }
  0x13   :  { %s1163_s11 = smov 0   ;;  %s1165_s12 = smov 0  }
  0x14 LB: > { %1366 = sst [smem:[#allocation9_spill]] %s1071_s29  ;;  %s786_s13 = sadd.s32 4294967295, %s1099_s12   ;;  %s1099_s12 = sphi %s1165_s12, %s26_s12   ;;  %s1095_s11 = sphi %s1163_s11, %s1385_s11   ;;  %s1091_s10 = sphi %s1161_s10, %s1384_s10   ;;  %s1087_s9 = sphi %s1159_s9, %s1383_s9   ;;  %s1083_s8 = sphi %s1157_s8, %s1388_s8   ;;  %s1079_s0 = sphi %s1155_s0, %s1381_s0   ;;  %s1075_s30 = sphi %s1153_s30, %s1387_s30   ;;  %s1071_s29 = sphi %s1151_s29, %s1386_s29  }
  0x15   : > { %1367 = sst [smem:[#allocation10_spill]] %s1079_s0  ;;  %s787_s14 = sadd.s32 4294967294, %s1099_s12  }
  0x16   : > { %1368 = sst [smem:[#allocation11_spill]] %s1091_s10  ;;  %s41_s15 = sadd.s32 1, %s1091_s10 }
  0x17   : > { %1369 = sst [smem:[#allocation12_spill]] %s1095_s11  ;;  %p43_p5 = scmp.ge.s32.totalorder %s41_s15, 4 }
  0x18   : > { %s45_s16 = sadd.s32 1, %s1095_s11  ;;  %p224_p6 = scmp.ne.s32.totalorder %s1079_s0, %s1075_s30 }
  0x19   : > { %p225_p7 = scmp.eq.s32.totalorder %s786_s13, 7  ;;  %s1390_s15 = smov (%p43_p5, %s41_s15), 0 }
  0x1a   : > { %1370 = sst [smem:[#allocation13_spill]] %s1390_s15  ;;  %s1392_s16 = smov (!%p43_p5, %s45_s16), %s1095_s11 }
  0x1b   : > { %p1200_p8 = por %p225_p7, %p224_p6  ;;  %p230_p9 = scmp.ne.s32.totalorder %s1075_s30, %s1071_s29 }
  0x1c   : > { %p47_p10 = scmp.ge.s32.totalorder %s1392_s16, 2  ;;  %p231_p11 = scmp.eq.s32.totalorder %s787_s14, 7 }
  0x1d   : > { %p790_p12 = scmp.ge.s32.totalorder %s1099_s12, 1  ;;  %p302_p13 = scmp.lt.s32.totalorder %s1099_s12, 9 }
  0x1e   : > { %s1394_s16 = smov (%p47_p10, %s1392_s16), 0  ;;  %p1210_p0 = por %p231_p11, %p230_p9 }
  0x1f   : > { %1372 = sst [smem:[#allocation14_spill]] %s1394_s16  ;;  %p303_p1 = pnand %p790_p12, %p302_p13 }
  0x20   : > { %s1373_s18 = scalar_select %p1210_p0, 1, 0 }
  0x21   : > { %s211_s19 = ssub.s32 %s1095_s11, %s1394_s16  ;;  %s214_s20 = sadd.s32 1, %s1079_s0 }
  0x22   : > { %1374 = sst [smem:[#allocation15_spill]] %s1373_s18  ;;  %p212_p2 = scmp.eq.s32.totalorder %s211_s19, 0 }
  0x23   : > { %306 = sbr.rel (%p303_p1) target bundleno = 706 (0x2c2), region = 44  ;;  %s1358_s22 = sand.u32 (!%p303_p1), 1, %s1075_s30  }
  0x24   : > { %s1218_s21 = scalar_select %p212_p2, %s1079_s0, %s214_s20  }
  0x25   : > { %p361_p3 = scmp.lt.s32.totalorder (!%p303_p1), %s1087_s9, 1  ;;  %s791_s23 = sshll.u32 (!%p303_p1), %s1358_s22, 3 }
  0x26   : > { %1375 = sst [smem:[#allocation16_spill]] %s1218_s21  ;;  %p365_p4 = scmp.lt.s32.totalorder (!%p303_p1), %s1083_s8, 3 }
  0x27   : > { %p396_p5 = scmp.eq.s32.totalorder (!%p303_p1), %s1083_s8, 0  ;;  %s1376_s1 = sld [smem:[#allocation17_spill]] (!%p303_p1) }
  0x2a   : > { %s362_s24 = scalar_select %p361_p3, %s1087_s9, 1 }
  0x2b   : > { %s1228_s25 = scalar_select %p365_p4, %s1083_s8, 3 }
  0x2c   : > { %s792_s26 = sshll.u32 %s362_s24, 3  ;;  %401 = sbr.rel (!%p396_p5) target bundleno = 51 (0x33), region = 48  ;;  %vm402_vm0 = vcmask (%p396_p5), 261120   ;;  %v1102_v0 = vmov (%p396_p5), 0.0  }
  0x2d   : > { %s1233_s13 = scalar_lea.vmem %s1376_s1, %s792_s26  ;;  %s809_s14 = sshll.u32 %s1228_s25, 5 }
  0x2e   : > { %s1239_s22 = scalar_lea.vmem %s1352_s2, %s809_s14  ;;  %s378_s11 = scalar_lea.vmem %s1353_s3, %s1228_s25 }
  0x2f   : > { %s810_s10 = sshll.u32 %s1228_s25, 7  ;;  %s391_s24 = scalar_lea.vmem %s1355_s5, %s1228_s25 }
  0x30   : > { %s1253_s27 = scalar_lea.vmem %s1354_s4, %s810_s10  ;;  %s395_s19 = scalar_lea.vmem %s1356_s6, %s792_s26 }
  0x31   : > { %s1258_s14 = scalar_lea.vmem [#allocation5], %s791_s23 }
  0x32   : > { %403 = vst.msk [vmem:[%s1258_s14] sm:$0xff] (%p396_p5), %vm402_vm0, %v1102_v0 }
  0x33 PF: > { %s799_s0 = sshll.u32 %s1087_s9, 2 }
  0x34   : > { %s405_s15 = sadd.s32 %s1083_s8, %s799_s0 }
  0x35   : > { %s406_s16 = sld [smem:[#allocation4 + %s405_s15]] }
  0x3b   : > { %p407_p6 = scmp.ne.s32.totalorder %s406_s16, 0 }
  0x3c   : > { %v413_v1 = vlaneseq (%p407_p6)  ;;  %v415_v2 = vstv (%p407_p6), %s1083_s8  ;;  %v412_v3 = vld [vmem:[%s395_s19] sm:$0xff] (%p407_p6)  ;;  %vm418_vm1 = vcmask (%p407_p6), 31744   ;;  %vm422_vm3 = vcmask (%p407_p6), 7168   ;;  %v424_v9 = vld [vmem:[%s1258_s14] sm:$0xff] (%p407_p6) }
  0x3d   : > { %411 = sbr.rel (!%p407_p6) target bundleno = 214 (0xd6), region = 52  ;;  %v801_v7 = vld [vmem:[%s391_s24] ss:$0 sm:$0xff] (%p407_p6)  ;;  %vm434_vm4 = vcmask (%p407_p6), 261120  }
  0x3e   : > { %v414_v4 = vand.u32 (%p407_p6), 127, %v413_v1 }
  0x40   : > { %vm416_vm2 = vcmp.eq.s32.totalorder (%p407_p6), %v414_v4, %v415_v2 }
  0x41   : > { %v417_v5 = vsel (%p407_p6), %vm416_vm2, %v412_v3, 0.0 }
  0x42   : > { %v419_v6 = vsel (%p407_p6), %vm418_vm1, %v417_v5, 0.0 }
  0x43   : > { %420 = vadd.xlane.f32.xlu0 (%p407_p6), %v419_v6 }
  0xd0   : > { %v421_v8 = vpop.xlane.xlu0 %420 }
  0xd1   : > { %423 = vst.msk [vmem:[#allocation2] sm:$0xff] %vm422_vm3, %v421_v8  ;;  %v432_v10 = vmul.f32 %v801_v7, %v421_v8 }
  0xd3   : > { %v433_v11 = vadd.f32 %v432_v10, %v424_v9 }
  0xd5   : > { %435 = vst.msk [vmem:[%s1258_s14] sm:$0xff] %vm434_vm4, %v433_v11 }
  0xd6 PF: > { %p802_p7 = scmp.eq.s32.totalorder %s406_s16, 0 }
  0xd7   : > { %v440_v12 = vld [vmem:[%s1239_s22] sm:$0xff] (!%p802_p7)  ;;  %v441_v13 = vld [vmem:[%s1239_s22 + $0x8] sm:$0xff] (!%p802_p7)  ;;  %v442_v14 = vld [vmem:[%s1239_s22 + $0x10] sm:$0xff] (!%p802_p7)  ;;  %v1103_v15 = vmov (!%p802_p7), 0.0|0.0   ;;  %vm1104_vm5 = vmmov (!%p802_p7), 0   ;;  %v1105_v18 = vmov (!%p802_p7), 0.0  }
  0xd8   : > { %438 = sbr.rel (%p802_p7) target bundleno = 681 (0x2a9), region = 56  ;;  %881 = vmatprep.subr.bf16.mxu0 (!%p802_p7), %v1103_v15  ;;  %v882_v16 = vpack.c.bf16 (!%p802_p7), %v441_v13, %v440_v12  ;;  %v443_v17 = vld [vmem:[%s1239_s22 + $0x18] sm:$0xff] (!%p802_p7)  ;;  %843 = vmatprep.mubr.msk.f32.mxu0 (!%p802_p7), %vm1104_vm5, %v1105_v18  ;;  %v535_v19 = vld [vmem:[%s1253_s27] sm:$0xff] (!%p802_p7)  ;;  %v536_v20 = vld [vmem:[%s1253_s27 + $0x8] sm:$0xff] (!%p802_p7)  ;;  %vm451_vm6 = vcmask (!%p802_p7), 261120   ;;  %v1106_v46 = vmov (!%p802_p7), 0  }
  0xd9   : > { %887 = vmatprep.subr.bf16.mxu1 (!%p802_p7), %v1103_v15  ;;  %878 = vmatprep.mubr.msk.f32.mxu1 (!%p802_p7), %vm1104_vm5, %v1105_v18  ;;  %v885_v21 = vpack.c.bf16 (!%p802_p7), %v443_v17, %v442_v14  ;;  %v888_v22 = vpack.c.bf16 (!%p802_p7), %v536_v20, %v535_v19  ;;  %v439_v23 = vld [vmem:[%s1233_s13] sm:$0xff] (!%p802_p7)  ;;  %v537_v24 = vld [vmem:[%s1253_s27 + $0x10] sm:$0xff] (!%p802_p7)  ;;  %v538_v25 = vld [vmem:[%s1253_s27 + $0x18] sm:$0xff] (!%p802_p7) }
  0xda   : > { %883 = vmatpush3.bf16.msra.mxu0 (!%p802_p7), %v882_v16  ;;  %v891_v26 = vpack.c.bf16 (!%p802_p7), %v538_v25, %v537_v24  ;;  %v539_v27 = vld [vmem:[%s1253_s27 + $0x20] sm:$0xff] (!%p802_p7)  ;;  %v540_v28 = vld [vmem:[%s1253_s27 + $0x28] sm:$0xff] (!%p802_p7)  ;;  %v541_v30 = vld [vmem:[%s1253_s27 + $0x30] sm:$0xff] (!%p802_p7)  ;;  %988 = vset.pattern.permute.xlu0 (!%p802_p7), %v1106_v46 }
  0xdb   : > { %884 = vmatprep.subr.bf16.mxu0 (!%p802_p7), %v1103_v15  ;;  %889 = vmatpush3.bf16.msra.mxu1 (!%p802_p7), %v888_v22  ;;  %v894_v29 = vpack.c.bf16 (!%p802_p7), %v540_v28, %v539_v27  ;;  %v542_v31 = vld [vmem:[%s1253_s27 + $0x38] sm:$0xff] (!%p802_p7)  ;;  %v543_v33 = vld [vmem:[%s1253_s27 + $0x40] sm:$0xff] (!%p802_p7)  ;;  %v544_v34 = vld [vmem:[%s1253_s27 + $0x48] sm:$0xff] (!%p802_p7) }
  0xdc   : > { %890 = vmatprep.subr.bf16.mxu1 (!%p802_p7), %v1103_v15  ;;  %v897_v32 = vpack.c.bf16 (!%p802_p7), %v542_v31, %v541_v30  ;;  %v900_v35 = vpack.c.bf16 (!%p802_p7), %v544_v34, %v543_v33  ;;  %v545_v36 = vld [vmem:[%s1253_s27 + $0x50] sm:$0xff] (!%p802_p7)  ;;  %v546_v37 = vld [vmem:[%s1253_s27 + $0x58] sm:$0xff] (!%p802_p7)  ;;  %v547_v39 = vld [vmem:[%s1253_s27 + $0x60] sm:$0xff] (!%p802_p7) }
  0xdd   : > { %v903_v38 = vpack.c.bf16 (!%p802_p7), %v546_v37, %v545_v36  ;;  %v548_v40 = vld [vmem:[%s1253_s27 + $0x68] sm:$0xff] (!%p802_p7)  ;;  %v549_v42 = vld [vmem:[%s1253_s27 + $0x70] sm:$0xff] (!%p802_p7)  ;;  %v550_v43 = vld [vmem:[%s1253_s27 + $0x78] sm:$0xff] (!%p802_p7) }
  0xde   : > { %886 = vmatpush3.bf16.msra.mxu0 (!%p802_p7), %v885_v21  ;;  %v906_v41 = vpack.c.bf16 (!%p802_p7), %v548_v40, %v547_v39  ;;  %v909_v44 = vpack.c.bf16 (!%p802_p7), %v550_v43, %v549_v42  ;;  %v534_v45 = vld [vmem:[#allocation2] sm:$0xff] (!%p802_p7)  ;;  %v627_v62 = vld [vmem:[%s1258_s14] sm:$0xff] (!%p802_p7) }
  0xdf   : > { %892 = vmatpush3.bf16.msra.mxu1 %v891_v26  ;;  %623 = vperm.xlu0 %988, %v534_v45   ;;  %v803_v47 = vld [vmem:[%s378_s11] ss:$0 sm:$0xff] }
  0xe0   : > { %893 = vmatprep.subr.bf16.mxu1 %v1103_v15 }
  0xe1   : > { %844 = vmatmul.mubr.msk.f32.vlgmr.msra.gmra.mrb[0].mxu0 %vm451_vm6, %v439_v23 }
  0xe3   : > { %895 = vmatpush3.bf16.msra.mxu1 %v894_v29 }
  0xe4   : > { %896 = vmatprep.subr.bf16.mxu1 %v1103_v15 }
  0xe7   : > { %898 = vmatpush3.bf16.msra.mxu1 %v897_v32 }
  0xe8   : > { %899 = vmatprep.subr.bf16.mxu1 %v1103_v15 }
  0xeb   : > { %901 = vmatpush3.bf16.msra.mxu1 %v900_v35 }
  0xec   : > { %902 = vmatprep.subr.bf16.mxu1 %v1103_v15 }
  0xef   : > { %904 = vmatpush3.bf16.msra.mxu1 %v903_v38 }
  0xf0   : > { %905 = vmatprep.subr.bf16.mxu1 %v1103_v15 }
  0xf3   : > { %907 = vmatpush3.bf16.msra.mxu1 %v906_v41 }
  0xf4   : > { %908 = vmatprep.subr.bf16.mxu1 %v1103_v15 }
  0xf7   : > { %910 = vmatpush3.bf16.msra.mxu1 %v909_v44 }
 0x15e   : > { %v624_v60 = vpop.permute.xlu0 %623 }
 0x1b4   : > { %v521_v48 = vpop.f32.mrb[0].mxu0 }
 0x1b5   : > { %v522_v49 = vadd.f32 %v803_v47, %v521_v48  ;;  %v845_v50 = vpop.f32.mrb[1].mxu0 }
 0x1b7   : > { %v526_v51 = vmul.f32 0.044715, %v522_v49  ;;  %v525_v57 = vmul.f32 0.5, %v522_v49 }
 0x1b9   : > { %v527_v52 = vmul.f32 %v526_v51, %v522_v49 }
 0x1bb   : > { %v528_v53 = vmul.f32 %v527_v52, %v522_v49 }
 0x1bd   : > { %v529_v54 = vadd.f32 %v528_v53, %v522_v49 }
 0x1bf   : > { %v530_v55 = vmul.f32 0.7978845, %v529_v54 }
 0x1c1   : > { %989 = vtanh.f32 %v530_v55 }
 0x1cb   : > { %v990_v56 = vpop.eup %989 }
 0x1cc   : > { %v532_v58 = vadd.f32 1.0, %v990_v56 }
 0x1ce   : > { %v533_v59 = vmul.f32 %v532_v58, %v525_v57 }
 0x1d0   : > { %879 = vmatmul.mubr.f32.vlgmr.msra.gmra.mrb[0].mxu1 %v533_v59 }
 0x2a3   : > { %v617_v61 = vpop.f32.mrb[0].mxu1 }
 0x2a4   : > { %v626_v63 = vmul.f32 %v624_v60, %v617_v61  ;;  %v880_v0 = vpop.f32.mrb[1].mxu1 }
 0x2a6   : > { %v628_v1 = vadd.f32 %v627_v62, %v626_v63 }
 0x2a8   : > { %629 = vst.msk [vmem:[%s1258_s14] sm:$0xff] %vm451_vm6, %v628_v1 }
 0x2a9 PF: > { %s806_s8 = sshll.u32 %s1087_s9, 7  ;;  %s644_s21 = sshll.u32 %s1258_s14, 4  ;;  %s645_s21 = int_to_ptr.vmem [resolvable:$true] %s644_s21 }
 0x2aa   : > { %s1300_s18 = scalar_lea.hbm %s1357_s7, %s806_s8  ;;  %s1377_s22 = sand.u32 1, %s1075_s30  }
 0x2ab   : > { %s631_s23 = scalar_lea.sflag [#allocation6], %s1377_s22  ;;  %s1003_s25 = scalar_lea.vmem %s645_s21, 128 }
 0x2ac   : > { %p1004_p9 = scmp.ne.s32.totalorder %s645_s21, %s1003_s25  ;;  %s1107_s26 = smov [#allocation5]  }
 0x2ad   : > { %s1007_s13 = sshll.u32 %s1107_s26, 4  ;;  %s1008_s13 = int_to_ptr.vmem [resolvable:$false] %s1007_s13 }
 0x2ae   : > { %p1005_p10 = pnand %p1004_p9, %p1200_p8  ;;  %s1009_s20 = scalar_lea.vmem %s1008_s13, 256 }
 0x2af   : > { %p1010_p12 = scmp.lt.s32.totalorder %s645_s21, %s1008_s13  ;;  %p1011_p13 = scmp.lt.s32.totalorder %s1009_s20, %s1003_s25 }
 0x2b0   : > { %p1006_p11 = pneg %p1005_p10 }
 0x2b1   : > { %p1012_p1 = por %p1011_p13, %p1010_p12 }
 0x2b3   : > { %p1013_p2 = pnand %p1012_p1, %p1006_p11 }
 0x2b5   : > { %1016 = shalt.err (!%p1013_p2)
}
 0x2b6   : > { %s1017_s9 = scalar_lea.hbm %s1300_s18, 128  ;;  %s1021_s28 = scalar_lea.hbm %s1357_s7, 256 }
 0x2b7   : > { %p1018_p3 = scmp.ne.s32.totalorder %s1300_s18, %s1017_s9  ;;  %p1022_p6 = scmp.lt.u32.totalorder %s1300_s18, %s1357_s7 }
 0x2b8   : > { %p1023_p7 = scmp.lt.u32.totalorder %s1021_s28, %s1017_s9  ;;  %p1025_p10 = scmp.lt.u32.totalorder %s1017_s9, %s1300_s18 }
 0x2b9   : > { %p1019_p4 = pnand %p1018_p3, %p1200_p8 }
 0x2ba   : > { %p1024_p9 = por %p1023_p7, %p1022_p6 }
 0x2bb   : > { %p1020_p5 = pneg %p1019_p4 }
 0x2bc   : > { %p1026_p11 = por %p1025_p10, %p1024_p9 }
 0x2be   : > { %p1027_p12 = pnand %p1026_p11, %p1020_p5 }
 0x2c0   : > { %1030 = shalt.err (!%p1027_p12)
}
 0x2c1   : > { %911 = dma.vmem_to_hbm [thread:$0]  (%p1200_p8), %s645_s21, 128, %s1300_s18, %s631_s23  }
 0x2c2 PF: > { %s1378_s0 = sld [smem:[#allocation9_spill]]  ;;  %p917_p13 = scmp.ge.s32.totalorder %s1099_s12, 2 }
 0x2c4   : > { %p914_p1 = pnand %p917_p13, %p1210_p0 }
 0x2c8   : > { %s656_s16 = sand.u32 1, %s1378_s0  }
 0x2c9   : > { %s657_s1 = scalar_lea.sflag [#allocation6], %s656_s16 }
 0x2ca   : > { %1066 = dma.done.wait (!%p914_p1), %s657_s1, 128  }
 0x2cb   : > { %1068 = vsyncadd (!%p914_p1), %s657_s1, 4294967168  ;;  %s26_s12 = sadd.s32 1, %s1099_s12   ;;  %s1380_s8 = sld [smem:[#allocation10_spill]] }
 0x2cc   : > { %p23_p2 = scmp.ge.s32.totalorder %s26_s12, 10   ;;  %s1381_s0 = sld [smem:[#allocation16_spill]] }
 0x2cd   : > { %s1382_s17 = sld [smem:[#allocation11_spill]]  ;;  %s1383_s9 = sld [smem:[#allocation12_spill]] }
 0x2ce   : > { %s1384_s10 = sld [smem:[#allocation13_spill]]  ;;  %s1385_s11 = sld [smem:[#allocation14_spill]] }
 0x2cf   : > { %s1386_s29 = smov %s1075_s30  ;;  %25 = sbr.rel (!%p23_p2) target bundleno = 20 (0x14), region = 106 }
 0x2d1   : > { %s1387_s30 = smov %s1380_s8 }
 0x2d3   : > { %s1388_s8 = smov %s1382_s17 }
 0x2d6   :  { %662 = vsyncpa [#allocation6], 1 }
 0x2d7   :  { %664 = vsyncpa [#allocation6 + $0x1], 1 }

</bundles_post_ra>
